<compile_context>
chip_gen: v7x
topology: tpu7x:2x2x1
jax: 0.10.0
libtpu: 0.0.40
codegen_flags: <defaults>
</compile_context>

<pallas_src>
import jax
import jax.numpy as jnp
from jax.experimental import pallas as pl
from jax.experimental.pallas import tpu as pltpu


def _critic_kernel(x_ref, a_ref, w1x_ref, w1a_ref, b1_ref, w2_ref, b2_ref,
                   w3_ref, b3_ref, q_ref):
    """Fused MLP forward for one batch tile: (x, a) -> 400 -> ReLU -> 300 -> ReLU -> 1."""
    # Layer 1 — split-weight f32 matmuls replace cat([x, a]) @ w1 (no HBM concat).
    # K is tiny, so f32 MXU cost is negligible; keeps full precision where cheap.
    h1 = jnp.dot(x_ref[...], w1x_ref[...], preferred_element_type=jnp.float32)
    h1 = h1 + jnp.dot(a_ref[...], w1a_ref[...], preferred_element_type=jnp.float32)
    # Bias + ReLU in bf16: halves VPU/vreg traffic on the [tb, 400] stage and is
    # exactly the operand dtype layer 2's MXU wants.
    h1 = jnp.maximum(h1.astype(jnp.bfloat16) + b1_ref[...], 0.0)       # [tb, 400] bf16

    # Layer 2 — bf16 operands into the MXU, f32 accumulate.
    h2 = jnp.dot(h1, w2_ref[...], preferred_element_type=jnp.float32)
    h2 = jnp.maximum(h2 + b2_ref[...], 0.0)                            # [tb, 300] f32

    # Q head (out_features == 1) — lane reduction instead of a 1-column MXU matmul.
    q = jnp.sum(h2 * w3_ref[...], axis=-1, keepdims=True) + b3_ref[...]  # [tb, 1] f32

    # Narrow store: 4 B/row of HBM writeback (no lane-broadcast slab).
    q_ref[...] = q.astype(q_ref.dtype)


def _round_up(n, m):
    return ((n + m - 1) // m) * m


def critic_forward(x, action, params, *, block_batch=2048):
    """Pallas wrapper. x: [B, obs_dim], action: [B, act_dim] -> q: [B, 1] (f32)."""
    w1, b1, w2, b2, w3, b3 = params
    batch, obs_dim = x.shape
    act_dim = action.shape[-1]

    # Split first-layer weight so the kernel never needs a concatenated input.
    w1x = w1[:obs_dim].astype(jnp.float32)
    w1a = w1[obs_dim:].astype(jnp.float32)
    b1_b = b1.astype(jnp.bfloat16).reshape(1, -1)       # bf16 bias for bf16 ReLU stage
    w2_b = w2.astype(jnp.bfloat16)                      # bf16 MXU operand
    b2_f = b2.astype(jnp.float32).reshape(1, -1)
    w3_f = w3.astype(jnp.float32).reshape(1, -1)        # (1, 300) row for lane reduction
    b3_f = b3.astype(jnp.float32).reshape(1, 1)

    x_f = x.astype(jnp.float32)
    a_f = action.astype(jnp.float32)

    # Batch tile: large enough to amortize ~0.35 us/step grid overhead, capped so
    # f32 temporaries (~5 KiB/row) stay inside scoped VMEM on all generations.
    tb = min(block_batch, _round_up(batch, 8))
    tb = _round_up(tb, 8)                               # sublane alignment
    grid = (pl.cdiv(batch, tb),)                        # ragged tail handled by Pallas
    # OOB reads on the final partial block are padded; OOB writes are masked.
    # Rows are fully independent through the MLP, so tail garbage never lands.

    # Weights/biases: constant index_map -> VMEM-resident across all grid steps.
    resident = lambda arr: pl.BlockSpec(arr.shape, lambda i: (0,) * arr.ndim)

    return pl.pallas_call(
        _critic_kernel,
        out_shape=jax.ShapeDtypeStruct((batch, 1), jnp.float32),
        grid=grid,
        in_specs=[
            pl.BlockSpec((tb, obs_dim), lambda i: (i, 0)),   # x tile (streamed)
            pl.BlockSpec((tb, act_dim), lambda i: (i, 0)),   # action tile (streamed)
            resident(w1x), resident(w1a), resident(b1_b),
            resident(w2_b), resident(b2_f),
            resident(w3_f), resident(b3_f),
        ],
        out_specs=pl.BlockSpec((tb, 1), lambda i: (i, 0)),
        compiler_params=pltpu.CompilerParams(
            dimension_semantics=("parallel",),               # 2-TC shard on v7x
            vmem_limit_bytes=48 * 1024 * 1024),
    )(x_f, a_f, w1x, w1a, b1_b, w2_b, b2_f, w3_f, b3_f)


def init_critic_params(key, obs_dim, act_dim, hidden=(400, 300)):
    """Deterministic synthetic init (PyTorch-style uniform fan-in bounds)."""
    dims = [obs_dim + act_dim, *hidden, 1]
    params = []
    for i in range(len(dims) - 1):
        fan_in, fan_out = dims[i], dims[i + 1]
        key, kw, kb = jax.random.split(key, 3)
        bound = 1.0 / jnp.sqrt(fan_in)
        w = jax.random.uniform(kw, (fan_in, fan_out), jnp.float32, -bound, bound)
        b = jax.random.uniform(kb, (1, fan_out), jnp.float32, -bound, bound)
        params += [w, b]
    return tuple(params)


def critic_reference(x, action, params):
    """Pure-JAX fp32 reference for correctness checking."""
    w1, b1, w2, b2, w3, b3 = params
    h = jnp.concatenate([x, action], axis=-1)
    h = jnp.maximum(h @ w1 + b1, 0.0)
    h = jnp.maximum(h @ w2 + b2, 0.0)
    return h @ w3 + b3


if __name__ == "__main__":
    key = jax.random.PRNGKey(0)
    k_obs, k_act, k_params = jax.random.split(key, 3)

    batch, obs_dim, act_dim = 8, 16, 8
    x = jax.random.normal(k_obs, (batch, obs_dim), jnp.float32)
    action = jax.random.normal(k_act, (batch, act_dim), jnp.float32)
    params = init_critic_params(k_params, obs_dim, act_dim)

    # Small-shape check (single grid step).
    q = jax.block_until_ready(critic_forward(x, action, params))
    q_ref = critic_reference(x, action, params)
    assert q.shape == (batch, 1)
    # bf16 layer-2 operands with f32 accumulation -> loosened tolerance vs f32 ref.
    assert jnp.allclose(q, q_ref, atol=5e-2, rtol=5e-2), "mismatch vs reference (small)"

    # Multi-tile check with a ragged final block (grid of 3, last block only
    # partially valid) — exercises the pad-free OOB-masked writeback path.
    big = 260
    kx2, ka2 = jax.random.split(jax.random.PRNGKey(1))
    x2 = jax.random.normal(kx2, (big, obs_dim), jnp.float32)
    a2 = jax.random.normal(ka2, (big, act_dim), jnp.float32)
    q2 = jax.block_until_ready(critic_forward(x2, a2, params, block_batch=128))
    q2_ref = critic_reference(x2, a2, params)
    assert q2.shape == (big, 1)
    assert jnp.allclose(q2, q2_ref, atol=5e-2, rtol=5e-2), "mismatch vs reference (tiled)"

    print("KERNEL_OK")
</pallas_src>

<mosaic_0001>
module attributes {stable_mosaic.version = 11 : i64} {
  func.func @_critic_kernel(%arg0: i32, %arg1: memref<8x16xf32, #tpu.memory_space<vmem>>, %arg2: memref<8x8xf32, #tpu.memory_space<vmem>>, %arg3: memref<16x400xf32, #tpu.memory_space<vmem>>, %arg4: memref<8x400xf32, #tpu.memory_space<vmem>>, %arg5: memref<1x400xbf16, #tpu.memory_space<vmem>>, %arg6: memref<400x300xbf16, #tpu.memory_space<vmem>>, %arg7: memref<1x300xf32, #tpu.memory_space<vmem>>, %arg8: memref<1x300xf32, #tpu.memory_space<vmem>>, %arg9: memref<1x1xf32, #tpu.memory_space<vmem>>, %arg10: memref<8x1xf32, #tpu.memory_space<vmem>>) attributes {dimension_semantics = [#tpu.dimension_semantics<parallel>], iteration_bounds = array<i64: 1>, scalar_prefetch = 0 : i64, scratch_operands = 0 : i64, tpu.core_type = #tpu.core_type<tc>, window_params = [{transform_indices = @transform_0, window_bounds = array<i64: 8, 16>}, {transform_indices = @transform_1, window_bounds = array<i64: 8, 8>}, {pipeline_mode = #tpu.pipeline_mode<synchronous>, transform_indices = @transform_2, window_bounds = array<i64: 16, 400>}, {pipeline_mode = #tpu.pipeline_mode<synchronous>, transform_indices = @transform_3, window_bounds = array<i64: 8, 400>}, {pipeline_mode = #tpu.pipeline_mode<synchronous>, transform_indices = @transform_4, window_bounds = array<i64: 1, 400>}, {pipeline_mode = #tpu.pipeline_mode<synchronous>, transform_indices = @transform_5, window_bounds = array<i64: 400, 300>}, {pipeline_mode = #tpu.pipeline_mode<synchronous>, transform_indices = @transform_6, window_bounds = array<i64: 1, 300>}, {pipeline_mode = #tpu.pipeline_mode<synchronous>, transform_indices = @transform_7, window_bounds = array<i64: 1, 300>}, {pipeline_mode = #tpu.pipeline_mode<synchronous>, transform_indices = @transform_8, window_bounds = array<i64: 1, 1>}, {transform_indices = @transform_9, window_bounds = array<i64: 8, 1>}]} {
    %c0 = arith.constant 0 : index
    %c0_0 = arith.constant 0 : index
    %0 = vector.load %arg1[%c0, %c0_0] : memref<8x16xf32, #tpu.memory_space<vmem>>, vector<8x16xf32>
    %c0_1 = arith.constant 0 : index
    %c0_2 = arith.constant 0 : index
    %1 = vector.load %arg3[%c0_1, %c0_2] : memref<16x400xf32, #tpu.memory_space<vmem>>, vector<16x400xf32>
    %cst = arith.constant dense<0.000000e+00> : vector<8x400xf32>
    %2 = tpu.matmul %0, %1, %cst {dimension_numbers = #tpu.dot_dimension_numbers<[1], [0], [0], [1], [0, 0, 1, 1], [], []>} : vector<8x16xf32>, vector<16x400xf32>, vector<8x400xf32> -> vector<8x400xf32>
    %c0_3 = arith.constant 0 : index
    %c0_4 = arith.constant 0 : index
    %3 = vector.load %arg2[%c0_3, %c0_4] : memref<8x8xf32, #tpu.memory_space<vmem>>, vector<8x8xf32>
    %c0_5 = arith.constant 0 : index
    %c0_6 = arith.constant 0 : index
    %4 = vector.load %arg4[%c0_5, %c0_6] : memref<8x400xf32, #tpu.memory_space<vmem>>, vector<8x400xf32>
    %cst_7 = arith.constant dense<0.000000e+00> : vector<8x400xf32>
    %5 = tpu.matmul %3, %4, %cst_7 {dimension_numbers = #tpu.dot_dimension_numbers<[1], [0], [0], [1], [0, 0, 1, 1], [], []>} : vector<8x8xf32>, vector<8x400xf32>, vector<8x400xf32> -> vector<8x400xf32>
    %6 = arith.addf %2, %5 : vector<8x400xf32>
    %7 = arith.truncf %6 : vector<8x400xf32> to vector<8x400xbf16>
    %c0_8 = arith.constant 0 : index
    %c0_9 = arith.constant 0 : index
    %8 = vector.load %arg5[%c0_8, %c0_9] : memref<1x400xbf16, #tpu.memory_space<vmem>>, vector<1x400xbf16>
    %9 = vector.broadcast %8 : vector<1x400xbf16> to vector<8x400xbf16>
    %10 = arith.addf %7, %9 : vector<8x400xbf16>
    %cst_10 = arith.constant 0.000000e+00 : bf16
    %11 = vector.broadcast %cst_10 : bf16 to vector<8x400xbf16>
    %12 = arith.maximumf %10, %11 : vector<8x400xbf16>
    %c0_11 = arith.constant 0 : index
    %c0_12 = arith.constant 0 : index
    %13 = vector.load %arg6[%c0_11, %c0_12] : memref<400x300xbf16, #tpu.memory_space<vmem>>, vector<400x300xbf16>
    %cst_13 = arith.constant dense<0.000000e+00> : vector<8x300xf32>
    %14 = tpu.matmul %12, %13, %cst_13 {dimension_numbers = #tpu.dot_dimension_numbers<[1], [0], [0], [1], [0, 0, 1, 1], [], []>} : vector<8x400xbf16>, vector<400x300xbf16>, vector<8x300xf32> -> vector<8x300xf32>
    %c0_14 = arith.constant 0 : index
    %c0_15 = arith.constant 0 : index
    %15 = vector.load %arg7[%c0_14, %c0_15] : memref<1x300xf32, #tpu.memory_space<vmem>>, vector<1x300xf32>
    %16 = vector.broadcast %15 : vector<1x300xf32> to vector<8x300xf32>
    %17 = arith.addf %14, %16 : vector<8x300xf32>
    %cst_16 = arith.constant 0.000000e+00 : f32
    %18 = vector.broadcast %cst_16 : f32 to vector<8x300xf32>
    %19 = arith.maximumf %17, %18 : vector<8x300xf32>
    %c0_17 = arith.constant 0 : index
    %c0_18 = arith.constant 0 : index
    %20 = vector.load %arg8[%c0_17, %c0_18] : memref<1x300xf32, #tpu.memory_space<vmem>>, vector<1x300xf32>
    %21 = vector.broadcast %20 : vector<1x300xf32> to vector<8x300xf32>
    %22 = arith.mulf %19, %21 : vector<8x300xf32>
    %cst_19 = arith.constant dense<0.000000e+00> : vector<8xf32>
    %23 = vector.multi_reduction <add>, %22, %cst_19 [1] : vector<8x300xf32> to vector<8xf32>
    %24 = vector.shape_cast %23 : vector<8xf32> to vector<8x1xf32>
    %c0_20 = arith.constant 0 : index
    %c0_21 = arith.constant 0 : index
    %25 = vector.load %arg9[%c0_20, %c0_21] : memref<1x1xf32, #tpu.memory_space<vmem>>, vector<1x1xf32>
    %26 = vector.broadcast %25 : vector<1x1xf32> to vector<8x1xf32>
    %27 = arith.addf %24, %26 : vector<8x1xf32>
    %c0_22 = arith.constant 0 : index
    %c0_23 = arith.constant 0 : index
    %28 = vector.load %arg10[%c0_22, %c0_23] : memref<8x1xf32, #tpu.memory_space<vmem>>, vector<8x1xf32>
    tpu.vector_store %arg10[%c0_22, %c0_23], %27 {strides = array<i32>} : memref<8x1xf32, #tpu.memory_space<vmem>>, vector<8x1xf32>,
    return
  }
  func.func @transform_0(%arg0: i32) -> (i32, i32) {
    %c0_i32 = arith.constant 0 : i32
    %c0_i32_0 = arith.constant 0 : i32
    return %arg0, %c0_i32 : i32, i32
  }
  func.func @transform_1(%arg0: i32) -> (i32, i32) {
    %c0_i32 = arith.constant 0 : i32
    %c0_i32_0 = arith.constant 0 : i32
    return %arg0, %c0_i32 : i32, i32
  }
  func.func @transform_2(%arg0: i32) -> (i32, i32) {
    %c0_i32 = arith.constant 0 : i32
    %c0_i32_0 = arith.constant 0 : i32
    %c0_i32_1 = arith.constant 0 : i32
    return %c0_i32, %c0_i32_0 : i32, i32
  }
  func.func @transform_3(%arg0: i32) -> (i32, i32) {
    %c0_i32 = arith.constant 0 : i32
    %c0_i32_0 = arith.constant 0 : i32
    %c0_i32_1 = arith.constant 0 : i32
    return %c0_i32, %c0_i32_0 : i32, i32
  }
  func.func @transform_4(%arg0: i32) -> (i32, i32) {
    %c0_i32 = arith.constant 0 : i32
    %c0_i32_0 = arith.constant 0 : i32
    %c0_i32_1 = arith.constant 0 : i32
    return %c0_i32, %c0_i32_0 : i32, i32
  }
  func.func @transform_5(%arg0: i32) -> (i32, i32) {
    %c0_i32 = arith.constant 0 : i32
    %c0_i32_0 = arith.constant 0 : i32
    %c0_i32_1 = arith.constant 0 : i32
    return %c0_i32, %c0_i32_0 : i32, i32
  }
  func.func @transform_6(%arg0: i32) -> (i32, i32) {
    %c0_i32 = arith.constant 0 : i32
    %c0_i32_0 = arith.constant 0 : i32
    %c0_i32_1 = arith.constant 0 : i32
    return %c0_i32, %c0_i32_0 : i32, i32
  }
  func.func @transform_7(%arg0: i32) -> (i32, i32) {
    %c0_i32 = arith.constant 0 : i32
    %c0_i32_0 = arith.constant 0 : i32
    %c0_i32_1 = arith.constant 0 : i32
    return %c0_i32, %c0_i32_0 : i32, i32
  }
  func.func @transform_8(%arg0: i32) -> (i32, i32) {
    %c0_i32 = arith.constant 0 : i32
    %c0_i32_0 = arith.constant 0 : i32
    %c0_i32_1 = arith.constant 0 : i32
    return %c0_i32, %c0_i32_0 : i32, i32
  }
  func.func @transform_9(%arg0: i32) -> (i32, i32) {
    %c0_i32 = arith.constant 0 : i32
    %c0_i32_0 = arith.constant 0 : i32
    return %arg0, %c0_i32 : i32, i32
  }
}

</mosaic_0001>

<bundles_post_ra>
// kernel: tpu_custom_call.1
= control target key start
LH: loop header
LB: loop body
LE: loop exit
PB: predicated region body
PF: predicated region fallthrough
CT: control target
= control target key end

     0   :  { %s1735_s0 = inlined_call_operand.hbm [shape: f32[8,16], index: 0, kind: input, shape index: {}]   ;;  %s1736_s1 = inlined_call_operand.hbm [shape: f32[8,8], index: 1, kind: input, shape index: {}]   ;;  %s1737_s2 = inlined_call_operand.hbm [shape: f32[16,400], index: 2, kind: input, shape index: {}]   ;;  %s1738_s3 = inlined_call_operand.hbm [shape: f32[8,400], index: 3, kind: input, shape index: {}]   ;;  %s1739_s4 = inlined_call_operand.vmem [shape: bf16[1,400], index: 4, kind: input, shape index: {}]   ;;  %s1740_s5 = inlined_call_operand.hbm [shape: bf16[400,300], index: 5, kind: input, shape index: {}]   ;;  %s1741_s6 = inlined_call_operand.vmem [shape: f32[1,300], index: 6, kind: input, shape index: {}]   ;;  %s1742_s7 = inlined_call_operand.vmem [shape: f32[1,300], index: 7, kind: input, shape index: {}]   ;;  %s1743_s8 = inlined_call_operand.<no memory space> [shape: f32[1,1], index: 8, kind: input, shape index: {}]   ;;  %s1744_s9 = inlined_call_operand.vmem [shape: f32[8,1], index: 9, kind: output, shape index: {}]  }
   0x1   :  { %v14_v0 = vstv %s1743_s8 }
   0x2   :  { %15 = vst [vmem:[#allocation2] sm:$0x1] %v14_v0 }
   0x3   :  { %16 = vsyncpa [#allocation4], 0 }
   0x4   :  { %17 = vsyncpa [#allocation6], 0 }
   0x5   :  { %18 = vsyncpa [#allocation9], 0  ;;  %s1548_s11 = smov [#allocation5]   ;;  %s1549_s13 = smov [#allocation8]  }
   0x6   :  { %s35_s12 = sshll.u32 %s1548_s11, 4  ;;  %s57_s14 = sshll.u32 %s1549_s13, 4  ;;  %s36_s12 = int_to_ptr.vmem [resolvable:$true] %s35_s12  ;;  %s58_s14 = int_to_ptr.vmem [resolvable:$true] %s57_s14 }
   0x7   :  { %s1432_s17 = scalar_lea.hbm %s1736_s1, 128 }
   0x8   :  { %p1433_p0 = scmp.ne.s32.totalorder %s1736_s1, %s1432_s17  ;;  %p1436_p1 = scmp.lt.u32.totalorder %s1432_s17, %s1736_s1 }
   0xa   :  { %p1438_p2 = pnand %p1436_p1, %p1433_p0 }
   0xc   :  { %1441 = shalt.err (!%p1438_p2)
}
   0xd   :  { %s1442_s21 = scalar_lea.vmem %s36_s12, 128  ;;  %p1447_p4 = scmp.lt.s32.totalorder %s36_s12, %s36_s12 }
   0xe   :  { %p1443_p3 = scmp.ne.s32.totalorder %s36_s12, %s1442_s21  ;;  %p1448_p5 = scmp.lt.s32.totalorder %s1442_s21, %s1442_s21 }
  0x10   :  { %p1449_p6 = por %p1448_p5, %p1447_p4 }
  0x12   :  { %p1450_p7 = pnand %p1449_p6, %p1443_p3 }
  0x14   :  { %1453 = shalt.err (!%p1450_p7)
}
  0x15   :  { %38 = dma.hbm_to_vmem [thread:$0]  %s1736_s1, 128, %s36_s12, [#allocation6]  }
  0x16   :  { %s1454_s26 = scalar_lea.hbm %s1738_s3, 512 }
  0x17   :  { %p1455_p8 = scmp.ne.s32.totalorder %s1738_s3, %s1454_s26  ;;  %p1458_p9 = scmp.lt.u32.totalorder %s1454_s26, %s1738_s3 }
  0x19   :  { %p1460_p10 = pnand %p1458_p9, %p1455_p8 }
  0x1b   :  { %1463 = shalt.err (!%p1460_p10)
}
  0x1c   :  { %s1464_s10 = scalar_lea.vmem %s58_s14, 512  ;;  %p1469_p12 = scmp.lt.s32.totalorder %s58_s14, %s58_s14 }
  0x1d   :  { %p1465_p11 = scmp.ne.s32.totalorder %s58_s14, %s1464_s10  ;;  %p1470_p13 = scmp.lt.s32.totalorder %s1464_s10, %s1464_s10 }
  0x1f   :  { %p1471_p0 = por %p1470_p13, %p1469_p12 }
  0x21   :  { %p1472_p1 = pnand %p1471_p0, %p1465_p11 }
  0x23   :  { %1475 = shalt.err (!%p1472_p1)
}
  0x24   :  { %60 = dma.hbm_to_vmem [thread:$0]  %s1738_s3, 512, %s58_s14, [#allocation9]  }
  0x25   :  { %s1550_s12 = smov [#allocation3]   ;;  %s1551_s15 = smov [#allocation7]  }
  0x26   :  { %s25_s13 = sshll.u32 %s1550_s12, 4  ;;  %s44_s16 = sshll.u32 %s1551_s15, 4  ;;  %s26_s13 = int_to_ptr.vmem [resolvable:$true] %s25_s13  ;;  %s1637_s16 = int_to_ptr.vmem [resolvable:$true] %s44_s16 }
  0x27   :  { %s1476_s19 = scalar_lea.hbm %s1735_s0, 128 }
  0x28   :  { %p1477_p2 = scmp.ne.s32.totalorder %s1735_s0, %s1476_s19  ;;  %p1480_p3 = scmp.lt.u32.totalorder %s1476_s19, %s1735_s0 }
  0x2a   :  { %p1482_p4 = pnand %p1480_p3, %p1477_p2 }
  0x2c   :  { %1485 = shalt.err (!%p1482_p4)
}
  0x2d   :  { %s1486_s3 = scalar_lea.vmem %s26_s13, 128  ;;  %p1491_p6 = scmp.lt.s32.totalorder %s26_s13, %s26_s13 }
  0x2e   :  { %p1487_p5 = scmp.ne.s32.totalorder %s26_s13, %s1486_s3  ;;  %p1492_p7 = scmp.lt.s32.totalorder %s1486_s3, %s1486_s3 }
  0x30   :  { %p1493_p8 = por %p1492_p7, %p1491_p6 }
  0x32   :  { %p1494_p9 = pnand %p1493_p8, %p1487_p5 }
  0x34   :  { %1497 = shalt.err (!%p1494_p9)
}
  0x35   :  { %28 = dma.hbm_to_vmem [thread:$0]  %s1735_s0, 128, %s26_s13, [#allocation4]  }
  0x36   :  { %s1498_s26 = scalar_lea.hbm %s1737_s2, 1024 }
  0x37   :  { %p1499_p10 = scmp.ne.s32.totalorder %s1737_s2, %s1498_s26  ;;  %p1502_p11 = scmp.lt.u32.totalorder %s1498_s26, %s1737_s2 }
  0x39   :  { %p1504_p12 = pnand %p1502_p11, %p1499_p10 }
  0x3b   :  { %1507 = shalt.err (!%p1504_p12)
}
  0x3c   :  { %s1508_s10 = scalar_lea.vmem %s1637_s16, 1024  ;;  %p1513_p0 = scmp.lt.s32.totalorder %s1637_s16, %s1637_s16 }
  0x3d   :  { %p1509_p13 = scmp.ne.s32.totalorder %s1637_s16, %s1508_s10  ;;  %p1514_p1 = scmp.lt.s32.totalorder %s1508_s10, %s1508_s10 }
  0x3f   :  { %p1515_p2 = por %p1514_p1, %p1513_p0 }
  0x41   :  { %p1516_p3 = pnand %p1515_p2, %p1509_p13 }
  0x43   :  { %1519 = shalt.err (!%p1516_p3)
}
  0x44   :  { %s1552_s0 = smov 512   ;;  %s1553_s1 = smov 32  }
  0x45   :  { %50 = dma.hbm_to_vmem [thread:$0]  %s1737_s2, 1024, %s1637_s16, [#allocation6], %s1552_s0, %s1552_s0, %s1553_s1  }
  0x46   :  { %s1554_s13 = smov [#allocation10]   ;;  %s1520_s19 = scalar_lea.hbm %s1740_s5, 9600 }
  0x47   :  { %s68_s15 = sshll.u32 %s1554_s13, 4  ;;  %p1521_p4 = scmp.ne.s32.totalorder %s1740_s5, %s1520_s19  ;;  %s69_s15 = int_to_ptr.vmem [resolvable:$true] %s68_s15 }
  0x48   :  { %p1524_p5 = scmp.lt.u32.totalorder %s1520_s19, %s1740_s5 }
  0x4a   :  { %p1526_p6 = pnand %p1524_p5, %p1521_p4 }
  0x4c   :  { %1529 = shalt.err (!%p1526_p6)
}
  0x4d   :  { %s1530_s3 = scalar_lea.vmem %s69_s15, 9600  ;;  %p1535_p8 = scmp.lt.s32.totalorder %s69_s15, %s69_s15 }
  0x4e   :  { %p1531_p7 = scmp.ne.s32.totalorder %s69_s15, %s1530_s3  ;;  %p1536_p9 = scmp.lt.s32.totalorder %s1530_s3, %s1530_s3 }
  0x50   :  { %p1537_p10 = por %p1536_p9, %p1535_p8 }
  0x52   :  { %p1538_p11 = pnand %p1537_p10, %p1531_p7 }
  0x54   :  { %1541 = shalt.err (!%p1538_p11)
}
  0x55   :  { %s1555_s2 = smov 192   ;;  %s1556_s16 = smov 12  }
  0x56   :  { %74 = dma.hbm_to_vmem [thread:$0]  %s1740_s5, 9600, %s69_s15, [#allocation9], %s1555_s2, %s1555_s2, %s1556_s16  }
  0x57   :  { %1542 = dma.done.wait [#allocation4], 128  }
  0x58   :  { %1543 = vsyncadd [#allocation4], 4294967168 }
  0x59   :  { %1544 = dma.done.wait [#allocation6], 1152  }
  0x5a   :  { %1545 = vsyncadd [#allocation6], 4294966144 }
  0x5b   :  { %1546 = dma.done.wait [#allocation9], 10112  }
  0x5c   :  { %1547 = vsyncadd [#allocation9], 4294957184  ;;  %v1557_v1 = vmov 0.0   ;;  %v108_v2 = vld [vmem:[#allocation8 + $0x8] sm:$0xff]  ;;  %v107_v3 = vld [vmem:[#allocation8] sm:$0xff]  ;;  %vm111_vm0 = vcmask 64512  }
  0x5d   :  { %179 = vmatprep.mubr.f32.mxu1 %v1557_v1  ;;  %v106_v4 = vld [vmem:[#allocation5] sm:$0xff]  ;;  %115 = vmatprep.subr.mxu1 %v108_v2  ;;  %v109_v6 = vld [vmem:[#allocation8 + $0x10] sm:$0xff]  ;;  %v99_v7 = vld [vmem:[#allocation7 + $0x8] sm:$0xff]  ;;  %vm257_vm1 = vcmask 130048   ;;  %vm1175_vm2 = vcmask 359424   ;;  %vm1188_vm3 = vcmask 7168  }
  0x5e   :  { %v110_v5 = vld [vmem:[#allocation8 + $0x18] sm:$0xff]  ;;  %116 = vmatpush1.msra.mxu1 %v107_v3  ;;  %v103_v8 = vld [vmem:[#allocation7 + $0x28] sm:$0xff]  ;;  %v98_v9 = vld [vmem:[#allocation7] sm:$0xff] }
  0x5f   :  { %v102_v10 = vld [vmem:[#allocation7 + $0x20] sm:$0xff]  ;;  %1197 = vmatmul.mubr.msk.f32.vlgmr.msra.gmra.mrb[0].mxu1 %vm111_vm0, %v106_v4  ;;  %186 = vmatprep.subr.mxu1 %v110_v5  ;;  %v1302_v11 = vpack.c.bf16 %v103_v8, %v99_v7  ;;  %v101_v12 = vld [vmem:[#allocation7 + $0x18] sm:$0xff]  ;;  %v100_v15 = vld [vmem:[#allocation7 + $0x10] sm:$0xff]  ;;  %v1558_v5 = vmov 0   ;;  %v420_v8 = vlaneseq }
  0x60   :  { %v105_v13 = vld [vmem:[#allocation7 + $0x38] sm:$0xff]  ;;  %187 = vmatpush1.msra.mxu1 %v109_v6  ;;  %250 = vmatprep.mubr.f32.mxu1 %v1557_v1  ;;  %v1304_v14 = vpack.c.bf16 %v102_v10, %v98_v9  ;;  %v104_v16 = vld [vmem:[#allocation7 + $0x30] sm:$0xff]  ;;  %v1334_v19 = vld [vmem:[#allocation10] ss:$12 sps:$4 sm:$0xff]   ;;  %v1559_v6 = vmov 1966171168  }
  0x61   :  { %1303 = vmatprep.subr.bf16.mxu1 %v1302_v11  ;;  %v1306_v17 = vpack.c.bf16 %v105_v13, %v101_v12  ;;  %v1332_v18 = vld [vmem:[#allocation10 + $0x4] ss:$12 sps:$4 sm:$0xff]   ;;  %v1335_v20 = vld [vmem:[#allocation10 + $0x1c] ss:$12 sps:$4 sm:$0xff]   ;;  %v1308_v22 = vpack.c.bf16 %v104_v16, %v100_v15  ;;  %v1338_v24 = vld [vmem:[#allocation10 + $0x34] ss:$12 sps:$4 sm:$0xff]   ;;  %v418_v7 = vunpack.c.l.s4 %v1559_v6 }
  0x62   :  { %989 = vmatprep.subr.bf16.mxu0 %v1332_v18  ;;  %v97_v21 = vld [vmem:[#allocation3] sm:$0xff]  ;;  %v1337_v23 = vld [vmem:[#allocation10 + $0x18] ss:$12 sps:$4 sm:$0xff]   ;;  %v1346_v31 = vld [vmem:[#allocation10 + $0x60] ss:$12 sps:$4 sm:$0xff]   ;;  %v1685_v10 = vshrl.u32 %v420_v8, 7 }
  0x63   :  { %1198 = vmatmul.mubr.msk.f32.vlgmr.msra.gmra.mrb[2].mxu1 %vm111_vm0, %v106_v4  ;;  %990 = vmatpush1.bf16.msra.mxu0 %v1334_v19  ;;  %v1340_v25 = vld [vmem:[#allocation10 + $0x30] ss:$12 sps:$4 sm:$0xff]   ;;  %v1341_v26 = vld [vmem:[#allocation10 + $0x4c] ss:$12 sps:$4 sm:$0xff]   ;;  %v1343_v27 = vld [vmem:[#allocation10 + $0x48] ss:$12 sps:$4 sm:$0xff]   ;;  %v419_v9 = vunpack.c.0.s8 %v418_v7 }
  0x64   :  { %1305 = vmatpush1.bf16.msra.mxu1 %v1304_v14  ;;  %325 = vmatprep.mubr.f32.mxu1 %v1557_v1  ;;  %v1344_v28 = vld [vmem:[#allocation10 + $0x64] ss:$12 sps:$4 sm:$0xff]   ;;  %v1358_v29 = vld [vmem:[#allocation10 + $0xc8] ss:$12 sps:$4 sm:$0xff]   ;;  %v1363_v32 = vld [vmem:[#allocation10 + $0xe0] ss:$12 sps:$4 sm:$0xff]  }
  0x65   :  { %1307 = vmatprep.subr.bf16.mxu1 %v1306_v17  ;;  %991 = vmatprep.subr.bf16.mxu0 %v1335_v20  ;;  %v1360_v30 = vld [vmem:[#allocation10 + $0x8] ss:$12 sps:$4 sm:$0xff]   ;;  %v1365_v33 = vld [vmem:[#allocation10 + $0x20] ss:$12 sps:$4 sm:$0xff]   ;;  %v1368_v35 = vld [vmem:[#allocation10 + $0xf8] ss:$12 sps:$4 sm:$0xff]   ;;  %v422_v12 = vsub.s32 %v419_v9, %v1685_v10 }
  0x66   :  { %v1347_v34 = vld [vmem:[#allocation10 + $0x7c] ss:$12 sps:$4 sm:$0xff]   ;;  %v1349_v36 = vld [vmem:[#allocation10 + $0x78] ss:$12 sps:$4 sm:$0xff]   ;;  %v1350_v38 = vld [vmem:[#allocation10 + $0x94] ss:$12 sps:$4 sm:$0xff]  }
  0x67   :  { %1199 = vmatmul.mubr.msk.f32.vlgmr.msra.gmra.mrb[0].mxu1 %vm257_vm1, %v97_v21  ;;  %992 = vmatpush1.bf16.msra.mxu0 %v1337_v23  ;;  %v1370_v37 = vld [vmem:[#allocation10 + $0x38] ss:$12 sps:$4 sm:$0xff]   ;;  %v1373_v39 = vld [vmem:[#allocation10 + $0x110] ss:$12 sps:$4 sm:$0xff]   ;;  %v1378_v43 = vld [vmem:[#allocation10 + $0x128] ss:$12 sps:$4 sm:$0xff]  }
  0x68   :  { %1309 = vmatpush1.bf16.msra.mxu1 %v1308_v22  ;;  %396 = vmatprep.mubr.f32.mxu1 %v1557_v1  ;;  %v1375_v40 = vld [vmem:[#allocation10 + $0x50] ss:$12 sps:$4 sm:$0xff]   ;;  %v1353_v42 = vld [vmem:[#allocation10 + $0xac] ss:$12 sps:$4 sm:$0xff]   ;;  %v1355_v44 = vld [vmem:[#allocation10 + $0xa8] ss:$12 sps:$4 sm:$0xff]  }
  0x69   :  { %993 = vmatprep.subr.bf16.mxu0 %v1338_v24  ;;  %1280 = vmatprep.subr.bf16.mxu1 %v1358_v29  ;;  %v1352_v41 = vld [vmem:[#allocation10 + $0x90] ss:$12 sps:$4 sm:$0xff]   ;;  %v1380_v45 = vld [vmem:[#allocation10 + $0x68] ss:$12 sps:$4 sm:$0xff]   ;;  %v1383_v46 = vld [vmem:[#allocation10 + $0x140] ss:$12 sps:$4 sm:$0xff]  }
  0x6a   :  { %v1356_v47 = vld [vmem:[#allocation10 + $0xc4] ss:$12 sps:$4 sm:$0xff]   ;;  %v1359_v48 = vld [vmem:[#allocation10 + $0xc0] ss:$12 sps:$4 sm:$0xff]   ;;  %v1361_v50 = vld [vmem:[#allocation10 + $0xdc] ss:$12 sps:$4 sm:$0xff]  }
  0x6b   :  { %1200 = vmatmul.mubr.msk.f32.vlgmr.msra.gmra.mrb[2].mxu1 %vm257_vm1, %v97_v21  ;;  %994 = vmatpush1.bf16.msra.mxu0 %v1340_v25  ;;  %v1385_v49 = vld [vmem:[#allocation10 + $0x80] ss:$12 sps:$4 sm:$0xff]   ;;  %v1364_v51 = vld [vmem:[#allocation10 + $0xd8] ss:$12 sps:$4 sm:$0xff]   ;;  %v1369_v53 = vld [vmem:[#allocation10 + $0xf0] ss:$12 sps:$4 sm:$0xff]  }
  0x6c   :  { %995 = vmatprep.subr.bf16.mxu0 %v1341_v26  ;;  %1281 = vmatpush3.bf16.msra.mxu1 %v1360_v30  ;;  %v1366_v52 = vld [vmem:[#allocation10 + $0xf4] ss:$12 sps:$4 sm:$0xff]   ;;  %v1371_v54 = vld [vmem:[#allocation10 + $0x10c] ss:$12 sps:$4 sm:$0xff]   ;;  %v1376_v56 = vld [vmem:[#allocation10 + $0x124] ss:$12 sps:$4 sm:$0xff]  }
  0x6d   :  { %1282 = vmatprep.subr.bf16.mxu1 %v1363_v32  ;;  %v1374_v55 = vld [vmem:[#allocation10 + $0x108] ss:$12 sps:$4 sm:$0xff]   ;;  %v1379_v57 = vld [vmem:[#allocation10 + $0x120] ss:$12 sps:$4 sm:$0xff]   ;;  %v1384_v59 = vld [vmem:[#allocation10 + $0x138] ss:$12 sps:$4 sm:$0xff]  }
  0x6e   :  { %v1381_v58 = vld [vmem:[#allocation10 + $0x13c] ss:$12 sps:$4 sm:$0xff]   ;;  %v1386_v60 = vld [vmem:[#allocation10 + $0x154] ss:$12 sps:$4 sm:$0xff]   ;;  %v1388_v61 = vld [vmem:[#allocation10 + $0x158] ss:$12 sps:$4 sm:$0xff]  }
  0x6f   :  { %996 = vmatpush1.bf16.msra.mxu0 %v1343_v27  ;;  %v1389_v62 = vld [vmem:[#allocation10 + $0x150] ss:$12 sps:$4 sm:$0xff]   ;;  %v1390_v63 = vld [vmem:[#allocation10 + $0x98] ss:$12 sps:$4 sm:$0xff]   ;;  %v1394_v2 = vld [vmem:[#allocation10 + $0x168] ss:$12 sps:$4 sm:$0xff]  }
  0x70   :  { %997 = vmatprep.subr.bf16.mxu0 %v1344_v28  ;;  %1283 = vmatpush3.bf16.msra.mxu1 %v1365_v33  ;;  %v1391_v0 = vld [vmem:[#allocation10 + $0x16c] ss:$12 sps:$4 sm:$0xff]   ;;  %v1393_v1 = vld [vmem:[#allocation10 + $0x170] ss:$12 sps:$4 sm:$0xff]   ;;  %v1696_v17 = vsub.s32 0, %v1685_v10 }
  0x71   :  { %1284 = vmatprep.subr.bf16.mxu1 %v1368_v35  ;;  %v1395_v3 = vld [vmem:[#allocation10 + $0xb0] ss:$12 sps:$4 sm:$0xff]   ;;  %v1399_v35 = vld [vmem:[#allocation10 + $0x188] ss:$12 sps:$4 sm:$0xff]  }
  0x72   :  { %v1398_v4 = vld [vmem:[#allocation10 + $0x184] ss:$12 sps:$4 sm:$0xff]  }
  0x73   :  { %998 = vmatpush1.bf16.msra.mxu0 %v1346_v31  ;;  %v1201_v11 = vld.sshfl [vmem:[%s1739_s4] sm:$0x33 pattern:$0x75316420] }
  0x74   :  { %999 = vmatprep.subr.bf16.mxu0 %v1347_v34  ;;  %1285 = vmatpush3.bf16.msra.mxu1 %v1370_v37  ;;  %v416_v13 = vcombine.high %v1201_v11, %v1201_v11  ;;  %v1691_v14 = vrot.slane %v1201_v11, %v422_v12  ;;  %v1396_v34 = vld [vmem:[#allocation10 + $0x180] ss:$12 sps:$4 sm:$0xff]   ;;  %v1402_v37 = vld [vmem:[#allocation10 + $0x19c] ss:$12 sps:$4 sm:$0xff]  }
  0x75   :  { %1286 = vmatprep.subr.bf16.mxu1 %v1373_v39 }
  0x76   :  { %v430_v15 = vrot.slane %v416_v13, %v422_v12  ;;  %v434_v16 = vpack.i.b16 %v1691_v14, %v1691_v14  ;;  %v581_v12 = vsub.s32 2, %v1685_v10  ;;  %v569_v13 = vld [vmem:[%s1741_s6] sm:$0x7] }
  0x77   :  { %1000 = vmatpush1.bf16.msra.mxu0 %v1349_v36 }
  0x78   :  { %1001 = vmatprep.subr.bf16.mxu0 %v1350_v38  ;;  %1287 = vmatpush3.bf16.msra.mxu1 %v1375_v40  ;;  %v441_v18 = vpack.i.b16 %v430_v15, %v430_v15  ;;  %v432_v19 = vcombine.high %v430_v15, %v430_v15  ;;  %v439_v20 = vrot.slane %v434_v16, %v1696_v17  ;;  %v1400_v40 = vld [vmem:[#allocation10 + $0x198] ss:$12 sps:$4 sm:$0xff]  }
  0x79   :  { %1288 = vmatprep.subr.bf16.mxu1 %v1378_v43  ;;  %v1404_v43 = vld [vmem:[#allocation10 + $0x1b0] ss:$12 sps:$4 sm:$0xff]   ;;  %v582_v15 = vrot.slane %v569_v13, %v581_v12  ;;  %v574_v16 = vrot.slane %v569_v13, %v1696_v17 }
  0x7a   :  { %v446_v22 = vrot.slane %v441_v18, %v1696_v17  ;;  %v455_v23 = vpack.i.b16 %v432_v19, %v432_v19 }
  0x7b   :  { %1002 = vmatpush1.bf16.msra.mxu0 %v1352_v41  ;;  %v1403_v41 = vld [vmem:[#allocation10 + $0x1a0] ss:$12 sps:$4 sm:$0xff]  }
  0x7c   :  { %1003 = vmatprep.subr.bf16.mxu0 %v1353_v42  ;;  %1289 = vmatpush3.bf16.msra.mxu1 %v1380_v45  ;;  %v460_v30 = vrot.slane %v455_v23, %v1696_v17  ;;  %v1406_v42 = vld [vmem:[#allocation10 + $0x1b4] ss:$12 sps:$4 sm:$0xff]   ;;  %v1410_v45 = vld [vmem:[#allocation10 + $0x1cc] ss:$12 sps:$4 sm:$0xff]  }
  0x7d   :  { %1290 = vmatprep.subr.bf16.mxu1 %v1383_v46  ;;  %v1408_v46 = vld [vmem:[#allocation10 + $0x1c8] ss:$12 sps:$4 sm:$0xff]  }
  0x7f   :  { %1004 = vmatpush1.bf16.msra.mxu0 %v1355_v44  ;;  %v1407_v44 = vld [vmem:[#allocation10 + $0x1b8] ss:$12 sps:$4 sm:$0xff]  }
  0x80   :  { %1005 = vmatprep.subr.bf16.mxu0 %v1356_v47  ;;  %1291 = vmatpush3.bf16.msra.mxu1 %v1385_v49  ;;  %v1411_v47 = vld [vmem:[#allocation10 + $0x1d0] ss:$12 sps:$4 sm:$0xff]   ;;  %v1412_v49 = vld [vmem:[#allocation10 + $0x1e0] ss:$12 sps:$4 sm:$0xff]  }
  0x81   :  { %1292 = vmatprep.subr.bf16.mxu1 %v1388_v61  ;;  %v1427_v61 = vld [vmem:[#allocation10 + $0x230] ss:$12 sps:$4 sm:$0xff]  }
  0x83   :  { %1006 = vmatpush1.bf16.msra.mxu0 %v1359_v48  ;;  %v1414_v48 = vld [vmem:[#allocation10 + $0x1e4] ss:$12 sps:$4 sm:$0xff]  }
  0x84   :  { %1007 = vmatprep.subr.bf16.mxu0 %v1361_v50  ;;  %1293 = vmatpush3.bf16.msra.mxu1 %v1390_v63  ;;  %v1415_v50 = vld [vmem:[#allocation10 + $0x1e8] ss:$12 sps:$4 sm:$0xff]  }
  0x85   :  { %1294 = vmatprep.subr.bf16.mxu1 %v1393_v1  ;;  %v1428_v1 = vld [vmem:[#allocation10 + $0x240] ss:$12 sps:$4 sm:$0xff]  }
  0x87   :  { %1008 = vmatpush1.bf16.msra.mxu0 %v1364_v51  ;;  %v1418_v51 = vld [vmem:[#allocation10 + $0x1fc] ss:$12 sps:$4 sm:$0xff]  }
  0x88   :  { %1009 = vmatprep.subr.bf16.mxu0 %v1366_v52  ;;  %1295 = vmatpush3.bf16.msra.mxu1 %v1395_v3  ;;  %v1416_v52 = vld [vmem:[#allocation10 + $0x1f8] ss:$12 sps:$4 sm:$0xff]  }
  0x89   :  { %1111 = vmatprep.subr.bf16.mxu1 %v1558_v5 }
  0x8b   :  { %1010 = vmatpush1.bf16.msra.mxu0 %v1369_v53  ;;  %v1419_v53 = vld [vmem:[#allocation10 + $0x200] ss:$12 sps:$4 sm:$0xff]  }
  0x8c   :  { %1011 = vmatprep.subr.bf16.mxu0 %v1371_v54  ;;  %v431_v54 = vcombine.high %v1691_v14, %v1691_v14  ;;  %v577_v14 = vsub.s32 1, %v1685_v10 }
  0x8e   :  { %v578_v18 = vrot.slane %v569_v13, %v577_v14 }
  0x8f   :  { %1012 = vmatpush1.bf16.msra.mxu0 %v1374_v55  ;;  %v1422_v55 = vld [vmem:[#allocation10 + $0x214] ss:$12 sps:$4 sm:$0xff]  }
  0x90   :  { %1013 = vmatprep.subr.bf16.mxu0 %v1376_v56  ;;  %v1420_v56 = vld [vmem:[#allocation10 + $0x210] ss:$12 sps:$4 sm:$0xff]  }
  0x93   :  { %1014 = vmatpush1.bf16.msra.mxu0 %v1379_v57  ;;  %v1423_v57 = vld [vmem:[#allocation10 + $0x218] ss:$12 sps:$4 sm:$0xff]  }
  0x94   :  { %1015 = vmatprep.subr.bf16.mxu0 %v1381_v58  ;;  %v448_v58 = vpack.i.b16 %v431_v54, %v431_v54 }
  0x96   :  { %v453_v63 = vrot.slane %v448_v58, %v1696_v17 }
  0x97   :  { %1016 = vmatpush1.bf16.msra.mxu0 %v1384_v59  ;;  %v1426_v59 = vld [vmem:[#allocation10 + $0x22c] ss:$12 sps:$4 sm:$0xff]  }
  0x98   :  { %1017 = vmatprep.subr.bf16.mxu0 %v1386_v60  ;;  %v1424_v60 = vld [vmem:[#allocation10 + $0x228] ss:$12 sps:$4 sm:$0xff]  }
  0x9b   :  { %1018 = vmatpush1.bf16.msra.mxu0 %v1389_v62 }
  0x9c   :  { %1019 = vmatprep.subr.bf16.mxu0 %v1391_v0  ;;  %v1430_v0 = vld [vmem:[#allocation10 + $0x244] ss:$12 sps:$4 sm:$0xff]  }
  0x9f   :  { %1020 = vmatpush1.bf16.msra.mxu0 %v1394_v2  ;;  %v1431_v2 = vld [vmem:[#allocation10 + $0x248] ss:$12 sps:$4 sm:$0xff]  }
  0xa0   :  { %1030 = vmatprep.subr.bf16.mxu0 %v1398_v4 }
 0x13a   :  { %v327_v21 = vpop.f32.mrb[0].mxu1 }
 0x13b   :  { %v403_v24 = vpack.c.bf16 %v327_v21, %v327_v21  ;;  %v329_v25 = vpop.f32.mrb[1].mxu1 }
 0x13c   :  { %v404_v26 = vpack.c.bf16 %v329_v25, %v329_v25 }
 0x13d   :  { %v461_v27 = vadd.bf16 %v439_v20, %v403_v24 }
 0x13e   :  { %v462_v28 = vadd.bf16 %v446_v22, %v404_v26  ;;  %v1700_v29 = vpop.f32.mrb[2].mxu1 }
 0x13f   :  { %v400_v31 = vpop.f32.mrb[3].mxu1  ;;  %v465_v36 = vmax.bf16 %v1558_v5, %v461_v27  ;;  %v405_v62 = vpack.c.bf16 %v1700_v29, %v1700_v29 }
 0x140   :  { %v406_v32 = vpack.c.bf16 %v400_v31, %v400_v31  ;;  %v466_v33 = vmax.bf16 %v1558_v5, %v462_v28 }
 0x141   :  { %v463_v3 = vadd.bf16 %v453_v63, %v405_v62 }
 0x142   :  { %v464_v38 = vadd.bf16 %v460_v30, %v406_v32  ;;  %1021 = vmatprep.mubr.bf16.mxu0 %v466_v33  ;;  %1103 = vmatprep.mubr.bf16.mxu1 %v466_v33 }
 0x143   :  { %1022 = vmatmul.mubr.bf16.vlgmr.msra.gmra.mrb[0].mxu0 %v465_v36  ;;  %1104 = vmatmul.mubr.bf16.vlgmr.msra.gmra.mrb[4].mxu1 %v465_v36  ;;  %v467_v4 = vmax.bf16 %v1558_v5, %v463_v3 }
 0x144   :  { %v468_v39 = vmax.bf16 %v1558_v5, %v464_v38  ;;  %1031 = vmatpush1.bf16.msra.mxu0 %v1396_v34  ;;  %1112 = vmatpush1.bf16.msra.mxu1 %v1399_v35 }
 0x145   :  { %1032 = vmatprep.subr.bf16.mxu0 %v1402_v37  ;;  %1113 = vmatprep.subr.bf16.mxu1 %v1558_v5 }
 0x146   :  { %1277 = vmatprep.mubr.msk.bf16.mxu0 %vm257_vm1, %v468_v39  ;;  %1278 = vmatprep.mubr.msk.bf16.mxu1 %vm257_vm1, %v468_v39 }
 0x148   :  { %1033 = vmatpush1.bf16.msra.mxu0 %v1400_v40  ;;  %1114 = vmatpush1.bf16.msra.mxu1 %v1403_v41  ;;  %v1279_v41 = vld [vmem:[#allocation2] ss:$0 sm:$0xff] }
 0x149   :  { %1034 = vmatprep.subr.bf16.mxu0 %v1406_v42  ;;  %1115 = vmatprep.subr.bf16.mxu1 %v1558_v5 }
 0x14c   :  { %1035 = vmatpush1.bf16.msra.mxu0 %v1404_v43  ;;  %1116 = vmatpush1.bf16.msra.mxu1 %v1407_v44 }
 0x14d   :  { %1036 = vmatprep.subr.bf16.mxu0 %v1410_v45  ;;  %1117 = vmatprep.subr.bf16.mxu1 %v1558_v5 }
 0x150   :  { %1037 = vmatpush1.bf16.msra.mxu0 %v1408_v46  ;;  %1118 = vmatpush1.bf16.msra.mxu1 %v1411_v47 }
 0x151   :  { %1038 = vmatprep.subr.bf16.mxu0 %v1414_v48  ;;  %1119 = vmatprep.subr.bf16.mxu1 %v1558_v5 }
 0x154   :  { %1039 = vmatpush1.bf16.msra.mxu0 %v1412_v49  ;;  %1120 = vmatpush1.bf16.msra.mxu1 %v1415_v50 }
 0x155   :  { %1040 = vmatprep.subr.bf16.mxu0 %v1418_v51  ;;  %1121 = vmatprep.subr.bf16.mxu1 %v1558_v5 }
 0x158   :  { %1041 = vmatpush1.bf16.msra.mxu0 %v1416_v52  ;;  %1122 = vmatpush1.bf16.msra.mxu1 %v1419_v53 }
 0x159   :  { %1042 = vmatprep.subr.bf16.mxu0 %v1422_v55  ;;  %1123 = vmatprep.subr.bf16.mxu1 %v1558_v5 }
 0x15c   :  { %1043 = vmatpush1.bf16.msra.mxu0 %v1420_v56  ;;  %1124 = vmatpush1.bf16.msra.mxu1 %v1423_v57 }
 0x15d   :  { %1044 = vmatprep.subr.bf16.mxu0 %v1426_v59  ;;  %1125 = vmatprep.subr.bf16.mxu1 %v1558_v5 }
 0x160   :  { %1045 = vmatpush1.bf16.msra.mxu0 %v1424_v60  ;;  %1126 = vmatpush1.bf16.msra.mxu1 %v1427_v61 }
 0x161   :  { %1046 = vmatprep.subr.bf16.mxu0 %v1430_v0  ;;  %1127 = vmatprep.subr.bf16.mxu1 %v1558_v5  ;;  %v1154_v5 = vld [vmem:[%s1742_s7] sm:$0x7] }
 0x162   :  { %v1159_v23 = vrot.slane %v1154_v5, %v1696_v17  ;;  %v1167_v27 = vrot.slane %v1154_v5, %v581_v12  ;;  %v1163_v10 = vrot.slane %v1154_v5, %v577_v14 }
 0x164   :  { %1047 = vmatpush1.bf16.msra.mxu0 %v1428_v1  ;;  %1128 = vmatpush1.bf16.msra.mxu1 %v1431_v2 }
 0x167   :  { %1063 = vmatmul.mubr.bf16.vlgmr.msra.gmra.mrb[0].mxu0 %v467_v4  ;;  %1144 = vmatmul.mubr.bf16.vlgmr.msra.gmra.mrb[8].mxu1 %v467_v4 }
 0x216   :  { %v1296_v6 = vpop.f32.mrb[4].mxu1 }
 0x217   :  { %v1297_v7 = vpop.f32.mrb[5].mxu1 }
 0x218   :  { %v1298_v8 = vadd.f32 %v1297_v7, %v1296_v6  ;;  %v1299_v9 = vpop.f32.mrb[6].mxu1 }
 0x219   :  { %v1300_v11 = vpop.f32.mrb[7].mxu1 }
 0x21a   :  { %v1106_v19 = vadd.f32 %v1298_v8, %v582_v15 }
 0x23a   :  { %v1064_v20 = vpop.f32.mrb[0].mxu0  ;;  %v1145_v21 = vpop.f32.mrb[8].mxu1 }
 0x23b   :  { %v1310_v22 = vadd.f32 %v1064_v20, %v574_v16  ;;  %v1146_v24 = vadd.f32 %v1145_v21, %v1106_v19  ;;  %v1066_v25 = vpop.f32.mrb[1].mxu0  ;;  %v1147_v26 = vpop.f32.mrb[9].mxu1 }
 0x23c   :  { %v1311_v28 = vadd.f32 %v1066_v25, %v578_v18  ;;  %v1068_v29 = vpop.f32.mrb[2].mxu0  ;;  %v1148_v30 = vpop.f32.mrb[10].mxu1 }
 0x23d   :  { %v1151_v31 = vmax.f32 %v1310_v22, 0.0  ;;  %v1153_v32 = vmax.f32 %v1146_v24, 0.0  ;;  %v1069_v33 = vpop.f32.mrb[3].mxu0  ;;  %v1149_v34 = vpop.f32.mrb[11].mxu1 }
 0x23e   :  { %v1152_v35 = vmax.f32 %v1311_v28, 0.0 }
 0x23f   :  { %v1171_v36 = vmul.f32 %v1159_v23, %v1151_v31  ;;  %v1173_v37 = vmul.f32 %v1167_v27, %v1153_v32 }
 0x240   :  { %v1172_v38 = vmul.f32 %v1163_v10, %v1152_v35 }
 0x241   :  { %v1176_v40 = vsel %vm1175_vm2, %v1173_v37, 0.0 }
 0x242   :  { %v1174_v39 = vadd.f32 %v1172_v38, %v1171_v36 }
 0x244   :  { %v1177_v17 = vadd.f32 %v1176_v40, %v1174_v39 }
 0x246   :  { %1178 = vadd.xlane.f32.xlu0 %v1177_v17 }
 0x2d3   :  { %v1179_v42 = vpop.xlane.xlu0 %1178 }
 0x2d4   :  { %v1187_v43 = vadd.f32 %v1279_v41, %v1179_v42 }
 0x2d6   :  { %1189 = vst.msk [vmem:[%s1744_s9] sm:$0xff] %vm1188_vm3, %v1187_v43 }
 0x2d7   :  { %1194 = vsyncpa [#allocation4], 1 }
 0x2d8   :  { %1195 = vsyncpa [#allocation6], 1 }
 0x2d9   :  { %1196 = vsyncpa [#allocation9], 1 }

</bundles_post_ra>
